<compile_context>
chip_gen: v6e
topology: v6e:2x2x1
jax: 0.10.0
libtpu: 0.0.40
codegen_flags: <defaults>
</compile_context>

<pallas_src>
import jax
import jax.numpy as jnp
from jax.experimental import pallas as pl
from jax.experimental.pallas import tpu as pltpu


_TARGET_BLOCK_BYTES = 4 << 20   # ~4 MiB per v block (review: 2-8 MiB for HBM roofline)
_VMEM_STEP_BUDGET = 20 << 20    # per-step footprint cap; safe on v7x's 64 MiB physical VMEM


def attention_kernel(v_ref, qmid_ref, wv_ref, wx_ref, bx_ref, o_ref):
    # v_ref   : (Nb, Cv, tS)  input tokens, channel-major (f32 or bf16)
    # qmid_ref: (Nb, Cm, 1)   per-batch q_lin output, f32 column
    # wv_ref  : (Cm, Cv)      v_conv weight, bf16 (resident: constant block index)
    # wx_ref  : (G, Cm)       x_conv weight, bf16 (resident)
    # bx_ref  : (G, 1)        x_conv bias, f32 (resident)
    # o_ref   : (Nb, G, tS)
    nb = v_ref.shape[0]
    wv = wv_ref[...]
    wx = wx_ref[...]
    bx = bx_ref[...]

    def body(b, carry):
        v = v_ref[b].astype(jnp.bfloat16)                            # no-op if already bf16
        # 1x1 conv (no bias) == channel matmul; lane-dense over tokens.
        v_mid = jnp.dot(wv, v, preferred_element_type=jnp.float32)   # (Cm, tS) f32
        h = jnp.maximum(v_mid + qmid_ref[b], 0.0)                    # q broadcast + ReLU, f32
        out = jnp.dot(wx, h.astype(jnp.bfloat16),
                      preferred_element_type=jnp.float32)            # (G, tS) f32
        o_ref[b] = (out + bx).astype(o_ref.dtype)                    # fused bias + cast epilogue
        return carry

    jax.lax.fori_loop(0, nb, body, 0, unroll=True)


def _round_up(x, m):
    return (x + m - 1) // m * m


def _step_bytes(nb, t, cv, cm, g, in_item, out_item):
    """Conservative per-grid-step VMEM footprint estimate."""
    v_blocks = 2 * nb * cv * t * in_item            # double-buffered input tile
    v_cast = cv * t * 2 if in_item > 2 else 0       # in-kernel bf16 copy of one batch row
    mid = cm * t * (4 + 2)                          # h in f32 + its bf16 cast
    out_blocks = 2 * nb * g * t * out_item          # double-buffered output tile
    q_blocks = 2 * nb * cm * 4                      # per-batch q columns
    weights = 2 * ((cm * cv + g * cm) * 2 + g * 4)  # resident bf16 weights + f32 bias
    return v_blocks + v_cast + mid + out_blocks + q_blocks + weights


def _plan_tiling(N, S, cv, cm, g, in_item, out_item):
    """Pick (Nb, tS, grid_s, S_pad) with byte-targeted tiles and a VMEM budget."""
    Sp = _round_up(S, 128)

    # Byte-targeted token tile (multiple of 128), clamped to the padded token count.
    t = (_TARGET_BLOCK_BYTES // max(1, in_item * cv)) // 128 * 128
    t = int(max(128, min(t, Sp)))
    # Shrink until the per-step footprint fits the VMEM budget.
    while t > 128 and _step_bytes(1, t, cv, cm, g, in_item, out_item) > _VMEM_STEP_BUDGET:
        t -= 128
    # Prefer a tile that exactly divides the padded token count (less padding waste),
    # but never shrink below half the byte-targeted tile to get it.
    cand = t
    while cand >= 128 and Sp % cand != 0:
        cand -= 128
    if cand >= max(128, t // 2):
        t = cand
    grid_s = pl.cdiv(Sp, t)
    S_pad = grid_s * t

    # Small-S workloads: pack several batch rows per grid step to amortize per-step
    # overhead, but keep >=8 total grid steps when possible (2 TensorCores on v7x).
    nb = 1
    if grid_s == 1 and N > 1:
        want = max(1, _TARGET_BLOCK_BYTES // max(1, in_item * cv * t))
        want = min(want, max(1, N // 8), N)
        for d in range(int(want), 0, -1):
            if N % d == 0 and _step_bytes(d, t, cv, cm, g, in_item, out_item) <= _VMEM_STEP_BUDGET:
                nb = d
                break

    # Single batch, single token tile: split tokens so both v7x TensorCores get work.
    if N == 1 and grid_s == 1 and Sp >= 256:
        t = _round_up(pl.cdiv(Sp, 2), 128)
        grid_s = pl.cdiv(Sp, t)
        S_pad = grid_s * t

    return nb, t, grid_s, S_pad


def attention_forward(v_nchw, q, wv, wq, bq, wx, bx, *, out_dtype=None):
    """v_nchw: [N, Cv, H, W], q: [N, Cq]. Returns [N, G, H, W] (matches PyTorch)."""
    N, Cv, H, W = v_nchw.shape
    S = H * W
    Cm = wv.shape[0]     # wv: [mid, v_features]  (PyTorch Conv2d weight squeezed)
    G = wx.shape[0]      # wx: [glimpses, mid]
    out_dtype = v_nchw.dtype if out_dtype is None else out_dtype

    in_item = jnp.dtype(v_nchw.dtype).itemsize
    out_item = jnp.dtype(out_dtype).itemsize
    Nb, tS, grid_s, S_pad = _plan_tiling(N, S, Cv, Cm, G, in_item, out_item)

    # Channel-major token layout: a pure reshape, no transpose / extra HBM pass.
    v_tok = v_nchw.reshape(N, Cv, S)
    if S_pad > S:
        # Only for non-128-aligned / non-dividing S; padded columns are sliced off below.
        v_tok = jnp.pad(v_tok, ((0, 0), (0, 0), (0, S_pad - S)))

    # q path: one tiny XLA matmul for the whole batch; kernel gets a (Cm, 1) column / batch.
    q_mid = (q.astype(jnp.float32) @ wq.T.astype(jnp.float32)
             + bq.astype(jnp.float32)).reshape(N, Cm, 1)

    # bf16 MXU operands (accumulation stays f32 inside the kernel).
    wv_b = wv.astype(jnp.bfloat16)                 # (Cm, Cv)
    wx_b = wx.astype(jnp.bfloat16)                 # (G, Cm)
    bx_col = bx.astype(jnp.float32).reshape(G, 1)  # (G, 1)

    # Explicit VMEM limit: generation-aware when the hardware query is available,
    # otherwise a v7x-safe 48 MiB; always well above the planned per-step footprint.
    fp = _step_bytes(Nb, tS, Cv, Cm, G, in_item, out_item)
    try:
        phys_vmem = int(pltpu.get_tpu_info().vmem_capacity_bytes)
    except Exception:
        phys_vmem = 64 << 20
    vmem_limit = int(min(phys_vmem * 3 // 4, max(48 << 20, 2 * fp)))

    grid = (N // Nb, grid_s)

    out_tok = pl.pallas_call(
        attention_kernel,
        out_shape=jax.ShapeDtypeStruct((N, G, S_pad), out_dtype),
        grid_spec=pltpu.PrefetchScalarGridSpec(
            num_scalar_prefetch=0,
            grid=grid,
            in_specs=[
                pl.BlockSpec((Nb, Cv, tS), lambda b, s: (b, 0, s)),  # v tokens (channel-major)
                pl.BlockSpec((Nb, Cm, 1), lambda b, s: (b, 0, 0)),   # q_mid column per batch
                pl.BlockSpec((Cm, Cv), lambda b, s: (0, 0)),         # wv (resident)
                pl.BlockSpec((G, Cm), lambda b, s: (0, 0)),          # wx (resident)
                pl.BlockSpec((G, 1), lambda b, s: (0, 0)),           # bx (resident)
            ],
            out_specs=pl.BlockSpec((Nb, G, tS), lambda b, s: (b, 0, s)),
        ),
        compiler_params=pltpu.CompilerParams(
            dimension_semantics=("parallel", "parallel"),
            vmem_limit_bytes=vmem_limit),
    )(v_tok, q_mid, wv_b, wx_b, bx_col)

    if S_pad > S:
        out_tok = out_tok[:, :, :S]
    # [N, G, S] -> [N, G, H, W] is a free reshape (no transpose).
    return out_tok.reshape(N, G, H, W)


def reference_forward(v_nchw, q, wv, wq, bq, wx, bx):
    """Plain-JAX f32 reference mirroring the PyTorch module (dropout p=0 is identity)."""
    v_tok = jnp.transpose(v_nchw, (0, 2, 3, 1))                     # [N,H,W,Cv]
    v_mid = jnp.einsum("nhwc,mc->nhwm", v_tok, wv)                  # 1x1 conv, no bias
    q_mid = q @ wq.T + bq                                           # [N, Cm]
    x = jax.nn.relu(v_mid + q_mid[:, None, None, :])
    out = jnp.einsum("nhwm,gm->nhwg", x, wx) + bx                   # 1x1 conv + bias
    return jnp.transpose(out, (0, 3, 1, 2))


if __name__ == "__main__":
    # Small but TPU-friendly shapes.
    N, Cv, H, W = 2, 32, 16, 16       # v: [2, 32, 16, 16] -> S = 256 tokens
    Cq, Cm, G = 32, 32, 8             # q_features, mid_features, glimpses

    key = jax.random.PRNGKey(0)
    k_v, k_q, k_wv, k_wq, k_bq, k_wx, k_bx = jax.random.split(key, 7)

    v = jax.random.normal(k_v, (N, Cv, H, W), dtype=jnp.float32)
    q = jax.random.normal(k_q, (N, Cq), dtype=jnp.float32)

    # Parameters (PyTorch weight shapes with the 1x1 dims squeezed):
    wv = 0.1 * jax.random.normal(k_wv, (Cm, Cv), dtype=jnp.float32)   # v_conv.weight[:, :, 0, 0]
    wq = 0.1 * jax.random.normal(k_wq, (Cm, Cq), dtype=jnp.float32)   # q_lin.weight
    bq = 0.1 * jax.random.normal(k_bq, (Cm,), dtype=jnp.float32)      # q_lin.bias
    wx = 0.1 * jax.random.normal(k_wx, (G, Cm), dtype=jnp.float32)    # x_conv.weight[:, :, 0, 0]
    bx = 0.1 * jax.random.normal(k_bx, (G,), dtype=jnp.float32)       # x_conv.bias

    out = attention_forward(v, q, wv, wq, bq, wx, bx)
    out = jax.block_until_ready(out)

    ref = reference_forward(v, q, wv, wq, bq, wx, bx)
    assert out.shape == (N, G, H, W), out.shape
    # bf16 matmul operands with f32 accumulation -> loosened tolerance vs the f32 reference.
    assert jnp.allclose(out, ref, atol=5e-2, rtol=5e-2), "mismatch vs reference"

    print("KERNEL_OK")
</pallas_src>

<mosaic_0001>
module attributes {stable_mosaic.version = 11 : i64} {
  func.func @attention_kernel(%arg0: i32, %arg1: i32, %arg2: memref<1x32x256xf32, #tpu.memory_space<vmem>>, %arg3: memref<1x32x1xf32, #tpu.memory_space<vmem>>, %arg4: memref<32x32xbf16, #tpu.memory_space<vmem>>, %arg5: memref<8x32xbf16, #tpu.memory_space<vmem>>, %arg6: memref<8x1xf32, #tpu.memory_space<vmem>>, %arg7: memref<1x8x256xf32, #tpu.memory_space<vmem>>) attributes {dimension_semantics = [#tpu.dimension_semantics<parallel>, #tpu.dimension_semantics<parallel>], iteration_bounds = array<i64: 2, 1>, scalar_prefetch = 0 : i64, scratch_operands = 0 : i64, tpu.core_type = #tpu.core_type<tc>, window_params = [{transform_indices = @transform_0, window_bounds = array<i64: 1, 32, 256>}, {transform_indices = @transform_1, window_bounds = array<i64: 1, 32, 1>}, {pipeline_mode = #tpu.pipeline_mode<synchronous>, transform_indices = @transform_2, window_bounds = array<i64: 32, 32>}, {pipeline_mode = #tpu.pipeline_mode<synchronous>, transform_indices = @transform_3, window_bounds = array<i64: 8, 32>}, {pipeline_mode = #tpu.pipeline_mode<synchronous>, transform_indices = @transform_4, window_bounds = array<i64: 8, 1>}, {transform_indices = @transform_5, window_bounds = array<i64: 1, 8, 256>}]} {
    %c0 = arith.constant 0 : index
    %c0_0 = arith.constant 0 : index
    %0 = vector.load %arg4[%c0, %c0_0] : memref<32x32xbf16, #tpu.memory_space<vmem>>, vector<32x32xbf16>
    %c0_1 = arith.constant 0 : index
    %c0_2 = arith.constant 0 : index
    %1 = vector.load %arg5[%c0_1, %c0_2] : memref<8x32xbf16, #tpu.memory_space<vmem>>, vector<8x32xbf16>
    %c0_3 = arith.constant 0 : index
    %c0_4 = arith.constant 0 : index
    %2 = vector.load %arg6[%c0_3, %c0_4] : memref<8x1xf32, #tpu.memory_space<vmem>>, vector<8x1xf32>
    %c0_i32 = arith.constant 0 : i32
    %3 = arith.index_cast %c0_i32 : i32 to index
    %c0_5 = arith.constant 0 : index
    %c0_6 = arith.constant 0 : index
    %4 = vector.load %arg2[%3, %c0_5, %c0_6] : memref<1x32x256xf32, #tpu.memory_space<vmem>>, vector<1x32x256xf32>
    %5 = vector.shape_cast %4 : vector<1x32x256xf32> to vector<32x256xf32>
    %6 = arith.truncf %5 : vector<32x256xf32> to vector<32x256xbf16>
    %cst = arith.constant dense<0.000000e+00> : vector<32x256xf32>
    %7 = tpu.matmul %0, %6, %cst {dimension_numbers = #tpu.dot_dimension_numbers<[1], [0], [0], [1], [0, 0, 1, 1], [], []>} : vector<32x32xbf16>, vector<32x256xbf16>, vector<32x256xf32> -> vector<32x256xf32>
    %8 = arith.index_cast %c0_i32 : i32 to index
    %c0_7 = arith.constant 0 : index
    %c0_8 = arith.constant 0 : index
    %9 = vector.load %arg3[%8, %c0_7, %c0_8] : memref<1x32x1xf32, #tpu.memory_space<vmem>>, vector<1x32x1xf32>
    %10 = vector.shape_cast %9 : vector<1x32x1xf32> to vector<32x1xf32>
    %11 = vector.broadcast %10 : vector<32x1xf32> to vector<32x256xf32>
    %12 = arith.addf %7, %11 : vector<32x256xf32>
    %cst_9 = arith.constant 0.000000e+00 : f32
    %13 = vector.broadcast %cst_9 : f32 to vector<32x256xf32>
    %14 = arith.maximumf %12, %13 : vector<32x256xf32>
    %15 = arith.truncf %14 : vector<32x256xf32> to vector<32x256xbf16>
    %cst_10 = arith.constant dense<0.000000e+00> : vector<8x256xf32>
    %16 = tpu.matmul %1, %15, %cst_10 {dimension_numbers = #tpu.dot_dimension_numbers<[1], [0], [0], [1], [0, 0, 1, 1], [], []>} : vector<8x32xbf16>, vector<32x256xbf16>, vector<8x256xf32> -> vector<8x256xf32>
    %17 = vector.broadcast %2 : vector<8x1xf32> to vector<8x256xf32>
    %18 = arith.addf %16, %17 : vector<8x256xf32>
    %19 = arith.index_cast %c0_i32 : i32 to index
    %c0_11 = arith.constant 0 : index
    %c0_12 = arith.constant 0 : index
    %20 = vector.load %arg7[%19, %c0_11, %c0_12] : memref<1x8x256xf32, #tpu.memory_space<vmem>>, vector<1x8x256xf32>
    %21 = vector.shape_cast %20 : vector<1x8x256xf32> to vector<8x256xf32>
    %22 = vector.shape_cast %18 : vector<8x256xf32> to vector<1x8x256xf32>
    tpu.vector_store %arg7[%19, %c0_11, %c0_12], %22 {strides = array<i32>} : memref<1x8x256xf32, #tpu.memory_space<vmem>>, vector<1x8x256xf32>,
    %c1_i32 = arith.constant 1 : i32
    return
  }
  func.func @transform_0(%arg0: i32, %arg1: i32) -> (i32, i32, i32) {
    %c0_i32 = arith.constant 0 : i32
    %c0_i32_0 = arith.constant 0 : i32
    return %arg0, %c0_i32, %arg1 : i32, i32, i32
  }
  func.func @transform_1(%arg0: i32, %arg1: i32) -> (i32, i32, i32) {
    %c0_i32 = arith.constant 0 : i32
    %c0_i32_0 = arith.constant 0 : i32
    %c0_i32_1 = arith.constant 0 : i32
    return %arg0, %c0_i32, %c0_i32_0 : i32, i32, i32
  }
  func.func @transform_2(%arg0: i32, %arg1: i32) -> (i32, i32) {
    %c0_i32 = arith.constant 0 : i32
    %c0_i32_0 = arith.constant 0 : i32
    %c0_i32_1 = arith.constant 0 : i32
    return %c0_i32, %c0_i32_0 : i32, i32
  }
  func.func @transform_3(%arg0: i32, %arg1: i32) -> (i32, i32) {
    %c0_i32 = arith.constant 0 : i32
    %c0_i32_0 = arith.constant 0 : i32
    %c0_i32_1 = arith.constant 0 : i32
    return %c0_i32, %c0_i32_0 : i32, i32
  }
  func.func @transform_4(%arg0: i32, %arg1: i32) -> (i32, i32) {
    %c0_i32 = arith.constant 0 : i32
    %c0_i32_0 = arith.constant 0 : i32
    %c0_i32_1 = arith.constant 0 : i32
    return %c0_i32, %c0_i32_0 : i32, i32
  }
  func.func @transform_5(%arg0: i32, %arg1: i32) -> (i32, i32, i32) {
    %c0_i32 = arith.constant 0 : i32
    %c0_i32_0 = arith.constant 0 : i32
    return %arg0, %c0_i32, %arg1 : i32, i32, i32
  }
}

</mosaic_0001>

<bundles_post_ra>
// kernel: tpu_custom_call.1
= control target key start
LH: loop header
LB: loop body
LE: loop exit
PB: predicated region body
PF: predicated region fallthrough
CT: control target
= control target key end

     0   :  { %10 = vsyncpa [#allocation3], 0  ;;  %s976_s0 = inlined_call_operand.hbm [shape: f32[2,32,256], index: 0, kind: input, shape index: {}]   ;;  %s977_s1 = inlined_call_operand.vmem [shape: f32[2,32,1], index: 1, kind: input, shape index: {}]   ;;  %s978_s2 = inlined_call_operand.vmem [shape: bf16[32,32], index: 2, kind: input, shape index: {}]   ;;  %s979_s3 = inlined_call_operand.vmem [shape: bf16[8,32], index: 3, kind: input, shape index: {}]   ;;  %s980_s4 = inlined_call_operand.vmem [shape: f32[8,1], index: 4, kind: input, shape index: {}]   ;;  %s981_s5 = inlined_call_operand.hbm [shape: f32[2,8,256], index: 5, kind: output, shape index: {}]  }
   0x1   :  { %12 = vsyncpa [#allocation3 + $0x1], 0 }
   0x2   :  { %13 = vsyncpa [#allocation4], 0 }
   0x3   :  { %15 = vsyncpa [#allocation4 + $0x1], 0  ;;  %s811_s18 = smov 0   ;;  %s813_s19 = smov 0  }
   0x4   :  { %s815_s20 = smov 0   ;;  %s817_s21 = smov 0  }
   0x5   :  { %s819_s22 = smov 0   ;;  %s821_s23 = smov 0  }
   0x6 LB: > { %s572_s24 = sadd.s32 4294967295, %s774_s23   ;;  %s573_s25 = sadd.s32 4294967294, %s774_s23   ;;  %s774_s23 = sphi %s821_s23, %s21_s23   ;;  %s770_s22 = sphi %s819_s22, %s992_s22   ;;  %s766_s21 = sphi %s817_s21, %s991_s21   ;;  %s762_s20 = sphi %s815_s20, %s990_s20   ;;  %s758_s19 = sphi %s813_s19, %s989_s19   ;;  %s754_s18 = sphi %s811_s18, %s988_s18  }
   0x7   : > { %s33_s26 = sadd.s32 1, %s770_s22  ;;  %s42_s27 = sadd.s32 1, %s762_s20 }
   0x8   : > { %p35_p0 = scmp.ge.s32.totalorder %s33_s26, 2  ;;  %p49_p1 = scmp.ne.s32.totalorder %s762_s20, %s758_s19 }
   0x9   : > { %p50_p2 = scmp.eq.s32.totalorder %s774_s23, 0  ;;  %p55_p3 = scmp.ne.s32.totalorder %s758_s19, %s754_s18 }
   0xa   : > { %s994_s26 = smov (%p35_p0, %s33_s26), 0  ;;  %p56_p5 = scmp.eq.s32.totalorder %s572_s24, 0 }
   0xb   : > { %p852_p4 = por %p50_p2, %p49_p1  ;;  %s37_s29 = ssub.s32 %s770_s22, %s994_s26 }
   0xc   : > { %p170_p6 = scmp.eq.s32.totalorder %s572_s24, 1  ;;  %p40_p7 = scmp.eq.s32.totalorder %s37_s29, 0 }
   0xd   : > { %p858_p8 = por %p56_p5, %p55_p3  ;;  %p176_p10 = scmp.eq.s32.totalorder %s573_s25, 1 }
   0xe   : > { %p862_p9 = por %p170_p6, %p49_p1  ;;  %p609_p13 = scmp.lt.s32.totalorder %s774_s23, 2 }
   0xf   : > { %s867_s7 = scalar_select %p40_p7, %s762_s20, %s42_s27  }
  0x10   : > { %p869_p11 = por %p176_p10, %p55_p3  ;;  %s205_s9 = sand.u32 1, %s762_s20  }
  0x11   : > { %s576_s10 = sshll.u32 %s205_s9, 6  ;;  %s594_s11 = sshll.u32 %s770_s22, 10 }
  0x12   : > { %s217_s14 = scalar_lea.hbm %s976_s0, %s594_s11  ;;  %s209_s15 = scalar_lea.vmem [#allocation2], %s576_s10 }
  0x13   : > { %s218_s16 = sshll.u32 %s209_s15, 4  ;;  %p882_p0 = pnand %p609_p13, %p852_p4  ;;  %s219_s16 = int_to_ptr.vmem [resolvable:$true] %s218_s16 }
  0x14   : > { %p579_p1 = scmp.ge.s32.totalorder %s774_s23, 1  ;;  %s206_s24 = scalar_lea.sflag [#allocation3], %s205_s9 }
  0x15   : > { %p668_p2 = pneg %p882_p0  ;;  %s679_s25 = scalar_lea.vmem %s219_s16, 1024 }
  0x16   : > { %p680_p3 = scmp.ne.s32.totalorder %s219_s16, %s679_s25  ;;  %s776_s27 = smov [#allocation2]  }
  0x17   : > { %s684_s29 = sshll.u32 %s776_s27, 4  ;;  %s685_s29 = int_to_ptr.vmem [resolvable:$false] %s684_s29 }
  0x18   : > { %p682_p5 = pnand %p680_p3, %p668_p2  ;;  %s686_s10 = scalar_lea.vmem %s685_s29, 2048 }
  0x19   : > { %p687_p7 = scmp.lt.s32.totalorder %s219_s16, %s685_s29  ;;  %p688_p10 = scmp.lt.s32.totalorder %s686_s10, %s679_s25 }
  0x1a   : > { %p683_p6 = pneg %p682_p5 }
  0x1b   : > { %p689_p12 = por %p688_p10, %p687_p7 }
  0x1d   : > { %p690_p4 = pnand %p689_p12, %p683_p6 }
  0x1f   : > { %693 = shalt.err (!%p690_p4)
}
  0x20   : > { %s777_s28 = smov 256   ;;  %s778_s9 = smov 16  }
  0x21   : > { %604 = dma.hbm_to_vmem [thread:$0]  (!%p882_p0), %s217_s14, 1024, %s219_s16, %s206_s24, %s777_s28, %s777_s28, %s778_s9  }
  0x22   : > { %p234_p13 = scmp.lt.s32.totalorder %s774_s23, 3 }
  0x24   : > { %p235_p2 = pnand %p579_p1, %p234_p13 }
  0x25   : > { %s895_s11 = sand.u32 (!%p235_p2), 1, %s758_s19  }
  0x26   : > { %238 = sbr.rel (%p235_p2) target bundleno = 488 (0x1e8), region = 40  ;;  %s580_s12 = sshll.u32 (!%p235_p2), %s895_s11, 6 }
  0x27   : > { %s241_s13 = scalar_lea.sflag (!%p235_p2), [#allocation3], %s895_s11  ;;  %s244_s15 = scalar_lea.vmem (!%p235_p2), [#allocation2], %s580_s12 }
  0x2b   : > { %745 = dma.done.wait (%p858_p8), %s241_s13, 1024  }
  0x2c   : > { %747 = vsyncadd (%p858_p8), %s241_s13, 4294966272  ;;  %p277_p12 = scmp.lt.s32.totalorder %s766_s21, 1  ;;  %v779_v0 = vmov 0   ;;  %v295_v1 = vld [vmem:[%s244_s15 + $0x28] sm:$0xff]  ;;  %v297_v2 = vld [vmem:[%s244_s15 + $0x38] sm:$0xff]  ;;  %vm336_vm0 = vcmask 261120  }
  0x2d   : > { %375 = vmatprep.mubr.bf16.mxu0 %v779_v0  ;;  %663 = vset.pattern.permute.xlu1 %v779_v0  ;;  %v294_v3 = vld [vmem:[%s244_s15 + $0x20] sm:$0xff]  ;;  %v301_v4 = vpack.c.bf16 %v297_v2, %v295_v1  ;;  %v296_v5 = vld [vmem:[%s244_s15 + $0x30] sm:$0xff]  ;;  %v291_v6 = vld [vmem:[%s244_s15 + $0x8] sm:$0xff]  ;;  %s780_s29 = smov [#allocation5]  }
  0x2e   : > { %s278_s14 = scalar_select %p277_p12, %s766_s21, 1  ;;  %662 = vset.pattern.permute.xlu0 %v779_v0  ;;  %448 = vmatprep.mubr.bf16.mxu1 %v779_v0  ;;  %v293_v7 = vld [vmem:[%s244_s15 + $0x18] sm:$0xff]  ;;  %v300_v8 = vpack.c.bf16 %v296_v5, %v294_v3  ;;  %v290_v10 = vld [vmem:[%s244_s15] sm:$0xff]  ;;  %v292_v11 = vld [vmem:[%s244_s15 + $0x10] sm:$0xff] }
  0x2f   : > { %v299_v9 = vpack.c.bf16 %v293_v7, %v291_v6  ;;  %355 = vmatprep.subr.bf16.mxu0 %v301_v4  ;;  %v298_v12 = vpack.c.bf16 %v292_v11, %v290_v10  ;;  %v664_v16 = vld [vmem:[%s978_s2] sm:$0xff]   ;;  %v665_v19 = vld [vmem:[%s978_s2 + $0x8] sm:$0xff]   ;;  %s581_s15 = sshll.u32 %s895_s11, 4  ;;  %s698_s10 = sshll.u32 %s780_s29, 4  ;;  %s699_s10 = int_to_ptr.vmem [resolvable:$false] %s698_s10 }
  0x30   : > { %s595_s16 = sshll.u32 %s278_s14, 5  ;;  %356 = vmatpush1.bf16.msra.mxu0 %v300_v8  ;;  %v289_v18 = vld [vmem:[%s980_s4] sm:$0xff]  ;;  %s596_s14 = sshll.u32 %s766_s21, 8 }
  0x31   : > { %s281_s24 = scalar_lea.vmem %s977_s1, %s595_s16  ;;  %357 = vmatprep.subr.bf16.mxu0 %v299_v9  ;;  %v288_v52 = vld [vmem:[%s979_s3] sm:$0xf]  ;;  %s275_s16 = scalar_lea.vmem [#allocation5], %s581_s15 }
  0x32   : > { %v302_v13 = vld [vmem:[%s281_s24] sm:$0xff]  ;;  %v304_v14 = vld [vmem:[%s281_s24 + $0x10] sm:$0xff]  ;;  %v303_v15 = vld [vmem:[%s281_s24 + $0x8] sm:$0xff]  ;;  %s476_s17 = sshll.u32 %s275_s16, 4  ;;  %s928_s25 = scalar_lea.hbm %s981_s5, %s596_s14  ;;  %s930_s17 = int_to_ptr.vmem [resolvable:$true] %s476_s17 }
  0x33   : > { %308 = vperm.xlu1 %663, %v302_v13   ;;  %318 = vperm.xlu0 %662, %v304_v14   ;;  %v305_v17 = vld [vmem:[%s281_s24 + $0x18] sm:$0xff]  ;;  %s460_s21 = scalar_lea.sflag [#allocation4], %s895_s11  ;;  %s694_s27 = scalar_lea.vmem %s930_s17, 256 }
  0x34   : > { %358 = vmatpush1.bf16.msra.mxu0 %v298_v12  ;;  %p695_p8 = scmp.ne.s32.totalorder %s930_s17, %s694_s27  ;;  %s700_s28 = scalar_lea.vmem %s699_s10, 512 }
  0x35   : > { %p701_p3 = scmp.lt.s32.totalorder %s930_s17, %s699_s10  ;;  %p702_p5 = scmp.lt.s32.totalorder %s700_s28, %s694_s27 }
  0x36   : > { %p696_p0 = pnand %p695_p8, %p862_p9 }
  0x37   : > { %313 = vperm.xlu1 %663, %v303_v15   ;;  %323 = vperm.xlu0 %662, %v305_v17   ;;  %p703_p6 = por %p702_p5, %p701_p3 }
  0x38   : > { %586 = vmatmul.mubr.msk.bf16.vlgmr.msra.gmra.mxu0 %vm336_vm0, %v664_v16  ;;  %p697_p1 = pneg %p696_p0 }
  0x39   : > { %385 = vmatprep.mubr.bf16.mxu0 %v779_v0 }
  0x3a   : > { %p704_p7 = pnand %p703_p6, %p697_p1 }
  0x3b   : > { %410 = vperm.xlu0 %662, %v289_v18  }
  0x40   : > { %587 = vmatmul.mubr.msk.bf16.gmra.mxu0 %vm336_vm0, %v665_v19 }
  0xae   : > { %v309_v23 = vpop.permute.xlu1 %308  ;;  %v319_v24 = vpop.permute.xlu0 %318 }
  0xb2   : > { %v314_v28 = vpop.permute.xlu1 %313  ;;  %v324_v29 = vpop.permute.xlu0 %323 }
  0xb6   : > { %v411_v53 = vpop.permute.xlu0 %410 }
  0xf8   : > { %v377_v20 = vpop.f32.mrf.mxu0 }
  0xf9   : > { %v378_v43 = vadd.f32 %v377_v20, %v309_v23 }
  0xfa   : > { %v379_v21 = vpop.f32.mrf.mxu0 }
  0xfb   : > { %v380_v36 = vadd.f32 %v379_v21, %v309_v23  ;;  %v396_v50 = vmax.f32 %v378_v43, 0.0 }
  0xfc   : > { %v381_v22 = vpop.f32.mrf.mxu0 }
  0xfd   : > { %v382_v38 = vadd.f32 %v381_v22, %v314_v28  ;;  %v397_v45 = vmax.f32 %v380_v36, 0.0 }
  0xfe   : > { %v383_v25 = vpop.f32.mrf.mxu0 }
  0xff   : > { %v384_v31 = vadd.f32 %v383_v25, %v314_v28  ;;  %v398_v47 = vmax.f32 %v382_v38, 0.0 }
 0x100   : > { %v387_v26 = vpop.f32.mrf.mxu0 }
 0x101   : > { %v388_v34 = vadd.f32 %v387_v26, %v319_v24  ;;  %v399_v40 = vmax.f32 %v384_v31, 0.0  ;;  %v404_v51 = vpack.c.bf16 %v398_v47, %v396_v50 }
 0x102   : > { %v389_v27 = vpop.f32.mrf.mxu0 }
 0x103   : > { %v390_v32 = vadd.f32 %v389_v27, %v319_v24  ;;  %v400_v44 = vmax.f32 %v388_v34, 0.0  ;;  %v405_v49 = vpack.c.bf16 %v399_v40, %v397_v45 }
 0x104   : > { %v391_v30 = vpop.f32.mrf.mxu0 }
 0x105   : > { %v392_v33 = vadd.f32 %v391_v30, %v324_v29  ;;  %v401_v41 = vmax.f32 %v390_v32, 0.0 }
 0x106   : > { %v393_v35 = vpop.f32.mrf.mxu0 }
 0x107   : > { %v394_v37 = vadd.f32 %v393_v35, %v324_v29  ;;  %v402_v39 = vmax.f32 %v392_v33, 0.0 }
 0x109   : > { %v403_v42 = vmax.f32 %v394_v37, 0.0  ;;  %v406_v48 = vpack.c.bf16 %v402_v39, %v400_v44 }
 0x10b   : > { %v407_v46 = vpack.c.bf16 %v403_v42, %v401_v41 }
 0x10d   : > { %428 = vmatprep.subr.bf16.mxu1 %v407_v46 }
 0x10e   : > { %429 = vmatpush1.bf16.msra.mxu1 %v406_v48 }
 0x10f   : > { %430 = vmatprep.subr.bf16.mxu1 %v405_v49 }
 0x112   : > { %431 = vmatpush1.bf16.msra.mxu1 %v404_v51 }
 0x115   : > { %588 = vmatmul.mubr.msk.bf16.vlgmr.msra.gmra.mxu1 %vm336_vm0, %v288_v52 }
 0x1d5   : > { %v450_v54 = vpop.f32.mrf.mxu1 }
 0x1d6   : > { %v451_v55 = vadd.f32 %v450_v54, %v411_v53 }
 0x1d7   : > { %v452_v56 = vpop.f32.mrf.mxu1 }
 0x1d8   : > { %457 = vst [vmem:[%s275_s16] sm:$0xff] %v451_v55  ;;  %v453_v57 = vadd.f32 %v452_v56, %v411_v53 }
 0x1d9   : > { %v454_v58 = vpop.f32.mrf.mxu1 }
 0x1da   : > { %458 = vst [vmem:[%s275_s16 + $0x8] sm:$0xff] %v453_v57 }
 0x1db   : > { %v455_v59 = vpop.f32.mrf.mxu1 }
 0x1dc   : > { %707 = shalt.err (!%p704_p7)
}
 0x1dd   : > { %s708_s9 = scalar_lea.hbm %s928_s25, 256  ;;  %s712_s13 = scalar_lea.hbm %s981_s5, 512 }
 0x1de   : > { %p709_p10 = scmp.ne.s32.totalorder %s928_s25, %s708_s9  ;;  %p713_p2 = scmp.lt.s32.totalorder %s928_s25, %s981_s5 }
 0x1df   : > { %p714_p12 = scmp.lt.s32.totalorder %s712_s13, %s708_s9 }
 0x1e0   : > { %p710_p4 = pnand %p709_p10, %p862_p9 }
 0x1e1   : > { %p715_p8 = por %p714_p12, %p713_p2 }
 0x1e2   : > { %p711_p13 = pneg %p710_p4 }
 0x1e4   : > { %p716_p0 = pnand %p715_p8, %p711_p13 }
 0x1e6   : > { %719 = shalt.err (!%p716_p0)
}
 0x1e7   : > { %599 = dma.vmem_to_hbm [thread:$0]  (%p862_p9), %s930_s17, 256, %s928_s25, %s460_s21  }
 0x1e8 PF: > { %s488_s16 = sand.u32 1, %s754_s18   ;;  %p987_p1 = scmp.ge.s32.totalorder %s774_s23, 2 }
 0x1e9   : > { %s489_s30 = scalar_lea.sflag [#allocation4], %s488_s16 }
 0x1ea   : > { %p606_p3 = pnand %p987_p1, %p869_p11 }
 0x1ec   : > { %p607_p5 = pneg %p606_p3 }
 0x1ee   : > { %749 = dma.done.wait (%p607_p5), %s489_s30, 256  }
 0x1ef   : > { %751 = vsyncadd (%p607_p5), %s489_s30, 4294967040  ;;  %s21_s23 = sadd.s32 1, %s774_s23   ;;  %s988_s18 = smov %s758_s19 }
 0x1f0   : > { %p18_p6 = scmp.ge.s32.totalorder %s21_s23, 4   ;;  %s989_s19 = smov %s762_s20 }
 0x1f1   : > { %s990_s20 = smov %s867_s7  ;;  %s991_s21 = smov %s770_s22 }
 0x1f2   : > { %s992_s22 = smov %s994_s26  ;;  %20 = sbr.rel (!%p18_p6) target bundleno = 6 (0x6), region = 88 }
 0x1f7   :  { %494 = vsyncpa [#allocation3], 1 }
 0x1f8   :  { %496 = vsyncpa [#allocation3 + $0x1], 1 }
 0x1f9   :  { %497 = vsyncpa [#allocation4], 1 }
 0x1fa   :  { %499 = vsyncpa [#allocation4 + $0x1], 1 }

</bundles_post_ra>
